<compile_context>
chip_gen: v6e
topology: v6e:2x2x1
jax: 0.10.0
libtpu: 0.0.40
codegen_flags: <defaults>
</compile_context>

<pallas_src>
import jax
import jax.numpy as jnp
from jax.experimental import pallas as pl
from jax.experimental.pallas import tpu as pltpu


def _round_up(x, m):
    return ((x + m - 1) // m) * m


def _sublane_multiple(dtype):
    # native sublane packing: 8 rows for 32-bit, 16 for 16-bit, 32 for 8-bit
    itemsize = jnp.dtype(dtype).itemsize
    if itemsize >= 4:
        return 8
    if itemsize == 2:
        return 16
    return 32


def _num_tensorcores():
    # Only split tiny batches into multiple grid steps where a second
    # TensorCore exists (v7x); on v5e/v6e that split is pure overhead.
    try:
        kind = jax.devices()[0].device_kind.lower()
    except Exception:
        return 1
    return 2 if ("v7" in kind or "7x" in kind) else 1


def classifier_kernel(x_ref, w1_ref, b1_ref, w2_ref, b2_ref, out_ref):
    # Fused: two MXU matmuls + VPU bias-add / ReLU on one resident batch tile.
    x = x_ref[...]
    h = jnp.dot(x, w1_ref[...], preferred_element_type=jnp.float32) + b1_ref[...]
    h = jnp.maximum(h, 0.0)                      # ReLU in f32 (safe on v5e too)
    out = jnp.dot(h.astype(w2_ref.dtype), w2_ref[...],
                  preferred_element_type=jnp.float32) + b2_ref[...]
    out_ref[...] = out.astype(out_ref.dtype)


def prepare_classifier_params(w1, b1, w2, b2, *, matmul_dtype=jnp.float32):
    """One-time parameter prep (hoisted out of the per-call forward path).

    Weights are cast to the matmul dtype; biases are reshaped to (1, N) and
    kept in f32 so bias-add / ReLU / accumulation stay full precision.
    """
    return (w1.astype(matmul_dtype),
            b1.reshape(1, -1).astype(jnp.float32),
            w2.astype(matmul_dtype),
            b2.reshape(1, -1).astype(jnp.float32))


def classifier_forward(x, params, *, tile_m=512):
    """Classifier forward: ReLU(x @ W1 + b1) @ W2 + b2 (raw logits).

    x      : (B, n_input)
    params : output of prepare_classifier_params
    """
    w1, b1, w2, b2 = params
    B, n_input = x.shape
    n_hidden = w1.shape[1]
    n_labels = w2.shape[1]
    matmul_dtype = w1.dtype
    in_item = jnp.dtype(matmul_dtype).itemsize

    # single cast (no padded intermediate); halves x HBM traffic on bf16 path
    x = x.astype(matmul_dtype)

    sub = _sublane_multiple(matmul_dtype)
    num_tc = _num_tensorcores()

    # --- batch tile selection -------------------------------------------
    # enough steps to keep each tile <= tile_m rows; on v7x, at least 2 steps
    # (when the batch has the rows for it) so both TensorCores get work.
    n_steps = max(pl.cdiv(B, tile_m), min(num_tc, max(B // sub, 1)))
    tm = _round_up(pl.cdiv(B, n_steps), sub)     # minimizes tail padding

    # VMEM-aware cap: double-buffered x/out tiles + resident weights + the
    # f32 hidden intermediate must fit a conservative budget on every gen.
    weight_bytes = 2 * (w1.size + w2.size) * in_item + 2 * (b1.size + b2.size) * 4
    bytes_per_row = 2 * (n_input * in_item + n_labels * 4) + n_hidden * 4
    vmem_budget = 24 << 20
    tm_cap = max(sub, ((max(vmem_budget - weight_bytes, 0) // max(bytes_per_row, 1))
                       // sub) * sub)
    tm = max(sub, min(tm, tm_cap))

    B_p = _round_up(B, tm)
    if B_p != B:
        # small zero tail only (tm chosen above to keep this minimal)
        x = jnp.pad(x, ((0, B_p - B), (0, 0)))
    grid = (B_p // tm,)

    vmem_est = (tm * bytes_per_row + weight_bytes + tm * n_hidden * 4)
    vmem_limit = int(max(32 << 20, min(48 << 20, vmem_est + (8 << 20))))

    flops = 2 * B_p * (n_input * n_hidden + n_hidden * n_labels)
    bytes_accessed = (B_p * n_input * in_item            # x
                      + (w1.size + w2.size) * in_item    # weights
                      + (b1.size + b2.size) * 4          # biases
                      + B_p * n_labels * 4)              # out

    out = pl.pallas_call(
        classifier_kernel,
        out_shape=jax.ShapeDtypeStruct((B_p, n_labels), jnp.float32),
        grid_spec=pltpu.PrefetchScalarGridSpec(
            num_scalar_prefetch=0,
            grid=grid,
            in_specs=[
                # native-width blocks: last-dim block == full array dim is legal
                pl.BlockSpec((tm, n_input), lambda i: (i, 0)),        # x tile
                pl.BlockSpec((n_input, n_hidden), lambda i: (0, 0)),  # W1 (resident)
                pl.BlockSpec((1, n_hidden), lambda i: (0, 0)),        # b1
                pl.BlockSpec((n_hidden, n_labels), lambda i: (0, 0)), # W2 (resident)
                pl.BlockSpec((1, n_labels), lambda i: (0, 0)),        # b2
            ],
            out_specs=pl.BlockSpec((tm, n_labels), lambda i: (i, 0)),
        ),
        compiler_params=pltpu.CompilerParams(
            dimension_semantics=("parallel",),
            vmem_limit_bytes=vmem_limit,
        ),
        cost_estimate=pl.CostEstimate(
            flops=flops, transcendentals=0, bytes_accessed=bytes_accessed),
    )(x, w1, b1, w2, b2)

    if B_p != B:
        out = out[:B]
    return out


def init_params(key, n_input, n_hidden, n_labels):
    # Deterministic init mimicking PyTorch Linear's U(-1/sqrt(fan_in), ...).
    k1, k2, k3, k4 = jax.random.split(key, 4)
    bound1 = 1.0 / jnp.sqrt(n_input)
    bound2 = 1.0 / jnp.sqrt(n_hidden)
    w1 = jax.random.uniform(k1, (n_input, n_hidden), jnp.float32, -bound1, bound1)
    b1 = jax.random.uniform(k2, (n_hidden,), jnp.float32, -bound1, bound1)
    w2 = jax.random.uniform(k3, (n_hidden, n_labels), jnp.float32, -bound2, bound2)
    b2 = jax.random.uniform(k4, (n_labels,), jnp.float32, -bound2, bound2)
    return w1, b1, w2, b2


if __name__ == "__main__":
    # Small shapes consistent with Classifier(n_input=32, n_hidden=32, n_labels=8)
    B, n_input, n_hidden, n_labels = 16, 32, 32, 8

    key = jax.random.PRNGKey(0)
    kx, kp = jax.random.split(key)
    x = jax.random.normal(kx, (B, n_input), jnp.float32)
    w1, b1, w2, b2 = init_params(kp, n_input, n_hidden, n_labels)

    # Pure-JAX reference
    ref = jnp.maximum(x @ w1 + b1[None, :], 0.0) @ w2 + b2[None, :]

    # f32 matmul path (exact vs reference); params prepared once, reused.
    params_f32 = prepare_classifier_params(w1, b1, w2, b2,
                                           matmul_dtype=jnp.float32)
    out = classifier_forward(x, params_f32)
    out = jax.block_until_ready(out)
    assert out.shape == (B, n_labels)
    assert jnp.allclose(out, ref, atol=1e-5, rtol=1e-5)

    # bf16 matmul-input path (v6e/v7x MXU-native); looser tolerance.
    params_bf16 = prepare_classifier_params(w1, b1, w2, b2,
                                            matmul_dtype=jnp.bfloat16)
    out_bf16 = classifier_forward(x, params_bf16)
    out_bf16 = jax.block_until_ready(out_bf16)
    assert jnp.allclose(out_bf16, ref, atol=5e-2, rtol=5e-2)

    print("KERNEL_OK")
</pallas_src>

<mosaic_0001>
module attributes {stable_mosaic.version = 11 : i64} {
  func.func @classifier_kernel(%arg0: i32, %arg1: memref<16x32xf32, #tpu.memory_space<vmem>>, %arg2: memref<32x32xf32, #tpu.memory_space<vmem>>, %arg3: memref<1x32xf32, #tpu.memory_space<vmem>>, %arg4: memref<32x8xf32, #tpu.memory_space<vmem>>, %arg5: memref<1x8xf32, #tpu.memory_space<vmem>>, %arg6: memref<16x8xf32, #tpu.memory_space<vmem>>) attributes {dimension_semantics = [#tpu.dimension_semantics<parallel>], iteration_bounds = array<i64: 1>, scalar_prefetch = 0 : i64, scratch_operands = 0 : i64, tpu.core_type = #tpu.core_type<tc>, window_params = [{transform_indices = @transform_0, window_bounds = array<i64: 16, 32>}, {pipeline_mode = #tpu.pipeline_mode<synchronous>, transform_indices = @transform_1, window_bounds = array<i64: 32, 32>}, {pipeline_mode = #tpu.pipeline_mode<synchronous>, transform_indices = @transform_2, window_bounds = array<i64: 1, 32>}, {pipeline_mode = #tpu.pipeline_mode<synchronous>, transform_indices = @transform_3, window_bounds = array<i64: 32, 8>}, {pipeline_mode = #tpu.pipeline_mode<synchronous>, transform_indices = @transform_4, window_bounds = array<i64: 1, 8>}, {transform_indices = @transform_5, window_bounds = array<i64: 16, 8>}]} {
    %c0 = arith.constant 0 : index
    %c0_0 = arith.constant 0 : index
    %0 = vector.load %arg1[%c0, %c0_0] : memref<16x32xf32, #tpu.memory_space<vmem>>, vector<16x32xf32>
    %c0_1 = arith.constant 0 : index
    %c0_2 = arith.constant 0 : index
    %1 = vector.load %arg2[%c0_1, %c0_2] : memref<32x32xf32, #tpu.memory_space<vmem>>, vector<32x32xf32>
    %cst = arith.constant dense<0.000000e+00> : vector<16x32xf32>
    %2 = tpu.matmul %0, %1, %cst {dimension_numbers = #tpu.dot_dimension_numbers<[1], [0], [0], [1], [0, 0, 1, 1], [], []>} : vector<16x32xf32>, vector<32x32xf32>, vector<16x32xf32> -> vector<16x32xf32>
    %c0_3 = arith.constant 0 : index
    %c0_4 = arith.constant 0 : index
    %3 = vector.load %arg3[%c0_3, %c0_4] : memref<1x32xf32, #tpu.memory_space<vmem>>, vector<1x32xf32>
    %4 = vector.broadcast %3 : vector<1x32xf32> to vector<16x32xf32>
    %5 = arith.addf %2, %4 : vector<16x32xf32>
    %cst_5 = arith.constant 0.000000e+00 : f32
    %6 = vector.broadcast %cst_5 : f32 to vector<16x32xf32>
    %7 = arith.maximumf %5, %6 : vector<16x32xf32>
    %c0_6 = arith.constant 0 : index
    %c0_7 = arith.constant 0 : index
    %8 = vector.load %arg4[%c0_6, %c0_7] : memref<32x8xf32, #tpu.memory_space<vmem>>, vector<32x8xf32>
    %cst_8 = arith.constant dense<0.000000e+00> : vector<16x8xf32>
    %9 = tpu.matmul %7, %8, %cst_8 {dimension_numbers = #tpu.dot_dimension_numbers<[1], [0], [0], [1], [0, 0, 1, 1], [], []>} : vector<16x32xf32>, vector<32x8xf32>, vector<16x8xf32> -> vector<16x8xf32>
    %c0_9 = arith.constant 0 : index
    %c0_10 = arith.constant 0 : index
    %10 = vector.load %arg5[%c0_9, %c0_10] : memref<1x8xf32, #tpu.memory_space<vmem>>, vector<1x8xf32>
    %11 = vector.broadcast %10 : vector<1x8xf32> to vector<16x8xf32>
    %12 = arith.addf %9, %11 : vector<16x8xf32>
    %c0_11 = arith.constant 0 : index
    %c0_12 = arith.constant 0 : index
    %13 = vector.load %arg6[%c0_11, %c0_12] : memref<16x8xf32, #tpu.memory_space<vmem>>, vector<16x8xf32>
    tpu.vector_store %arg6[%c0_11, %c0_12], %12 {strides = array<i32>} : memref<16x8xf32, #tpu.memory_space<vmem>>, vector<16x8xf32>,
    return
  }
  func.func @transform_0(%arg0: i32) -> (i32, i32) {
    %c0_i32 = arith.constant 0 : i32
    %c0_i32_0 = arith.constant 0 : i32
    return %arg0, %c0_i32 : i32, i32
  }
  func.func @transform_1(%arg0: i32) -> (i32, i32) {
    %c0_i32 = arith.constant 0 : i32
    %c0_i32_0 = arith.constant 0 : i32
    %c0_i32_1 = arith.constant 0 : i32
    return %c0_i32, %c0_i32_0 : i32, i32
  }
  func.func @transform_2(%arg0: i32) -> (i32, i32) {
    %c0_i32 = arith.constant 0 : i32
    %c0_i32_0 = arith.constant 0 : i32
    %c0_i32_1 = arith.constant 0 : i32
    return %c0_i32, %c0_i32_0 : i32, i32
  }
  func.func @transform_3(%arg0: i32) -> (i32, i32) {
    %c0_i32 = arith.constant 0 : i32
    %c0_i32_0 = arith.constant 0 : i32
    %c0_i32_1 = arith.constant 0 : i32
    return %c0_i32, %c0_i32_0 : i32, i32
  }
  func.func @transform_4(%arg0: i32) -> (i32, i32) {
    %c0_i32 = arith.constant 0 : i32
    %c0_i32_0 = arith.constant 0 : i32
    %c0_i32_1 = arith.constant 0 : i32
    return %c0_i32, %c0_i32_0 : i32, i32
  }
  func.func @transform_5(%arg0: i32) -> (i32, i32) {
    %c0_i32 = arith.constant 0 : i32
    %c0_i32_0 = arith.constant 0 : i32
    return %arg0, %c0_i32 : i32, i32
  }
}

</mosaic_0001>

<bundles_post_ra>
// kernel: tpu_custom_call.1
= control target key start
LH: loop header
LB: loop body
LE: loop exit
PB: predicated region body
PF: predicated region fallthrough
CT: control target
= control target key end

     0   :  { %10 = vsyncpa [#allocation3], 0  ;;  %s296_s18 = smov [#allocation2]   ;;  %s372_s0 = inlined_call_operand.hbm [shape: f32[16,32], index: 0, kind: input, shape index: {}]   ;;  %s373_s1 = inlined_call_operand.vmem [shape: f32[32,32], index: 1, kind: input, shape index: {}]   ;;  %s374_s2 = inlined_call_operand.vmem [shape: f32[1,32], index: 2, kind: input, shape index: {}]   ;;  %s375_s3 = inlined_call_operand.vmem [shape: f32[32,8], index: 3, kind: input, shape index: {}]   ;;  %s376_s4 = inlined_call_operand.vmem [shape: f32[1,8], index: 4, kind: input, shape index: {}]   ;;  %s377_s5 = inlined_call_operand.vmem [shape: f32[16,8], index: 5, kind: output, shape index: {}]  }
   0x1   :  { %s16_s19 = sshll.u32 %s296_s18, 4  ;;  %s17_s19 = int_to_ptr.vmem [resolvable:$true] %s16_s19 }
   0x2   :  { %s282_s20 = scalar_lea.vmem %s17_s19, 256  ;;  %p287_p1 = scmp.lt.s32.totalorder %s17_s19, %s17_s19 }
   0x3   :  { %p283_p0 = scmp.ne.s32.totalorder %s17_s19, %s282_s20  ;;  %p288_p2 = scmp.lt.s32.totalorder %s282_s20, %s282_s20 }
   0x5   :  { %p289_p3 = por %p288_p2, %p287_p1 }
   0x7   :  { %p290_p4 = pnand %p289_p3, %p283_p0 }
   0x9   :  { %293 = shalt.err (!%p290_p4)
}
   0xa   :  { %s297_s21 = smov 128   ;;  %s298_s22 = smov 8  }
   0xb   :  { %22 = dma.hbm_to_vmem [thread:$0]  %s372_s0, 256, %s17_s19, [#allocation3], %s297_s21, %s297_s21, %s298_s22  }
   0xc   :  { %294 = dma.done.wait [#allocation3], 256  }
   0xd   :  { %295 = vsyncadd [#allocation3], 4294967040  ;;  %vm47_vm0 = vcmask 261120   ;;  %v39_v0 = vld [vmem:[%s373_s1 + $0x18] sm:$0xff]  ;;  %v38_v1 = vld [vmem:[%s373_s1 + $0x10] sm:$0xff]  ;;  %vm223_vm1 = vcmask 64512  }
   0xe   :  { %249 = vmatprep.subr.mxu0 %v39_v0  ;;  %v34_v2 = vld [vmem:[#allocation2] sm:$0xff]  ;;  %v37_v3 = vld [vmem:[%s373_s1 + $0x8] sm:$0xff]  ;;  %v134_v6 = vld [vmem:[%s375_s3 + $0x18] sm:$0xff] }
   0xf   :  { %250 = vmatpush3.msra.mxu0 %v39_v0  ;;  %257 = vmatprep.mubr.msk.f32.mxu0 %vm47_vm0, %v34_v2  ;;  %v36_v4 = vld [vmem:[%s373_s1] sm:$0xff]  ;;  %v35_v5 = vld [vmem:[#allocation2 + $0x8] sm:$0xff]  ;;  %v133_v7 = vld [vmem:[%s375_s3 + $0x10] sm:$0xff] }
  0x10   :  { %251 = vmatprep.subr.mxu0 %v38_v1  ;;  %260 = vmatprep.subr.mxu1 %v134_v6  ;;  %v132_v8 = vld [vmem:[%s375_s3 + $0x8] sm:$0xff]  ;;  %v131_v9 = vld [vmem:[%s375_s3] sm:$0xff] }
  0x11   :  { %252 = vmatpush3.msra.mxu0 %v38_v1  ;;  %261 = vmatpush3.msra.mxu1 %v134_v6  ;;  %v231_v10 = vld [vmem:[%s374_s2] ss:$0 sm:$0xff] }
  0x12   :  { %253 = vmatprep.subr.mxu0 %v37_v3  ;;  %262 = vmatprep.subr.mxu1 %v133_v7  ;;  %v234_v17 = vld [vmem:[%s376_s4] ss:$0 sm:$0xff] }
  0x13   :  { %254 = vmatpush3.msra.mxu0 %v37_v3  ;;  %263 = vmatpush3.msra.mxu1 %v133_v7 }
  0x14   :  { %255 = vmatprep.subr.mxu0 %v36_v4  ;;  %264 = vmatprep.subr.mxu1 %v132_v8 }
  0x15   :  { %256 = vmatpush3.msra.mxu0 %v36_v4  ;;  %265 = vmatpush3.msra.mxu1 %v132_v8 }
  0x16   :  { %258 = vmatmul.mubr.msk.f32.vlgmr.msra.gmra.mxu0 %vm47_vm0, %v35_v5  ;;  %266 = vmatprep.subr.mxu1 %v131_v9 }
  0x17   :  { %267 = vmatpush3.msra.mxu1 %v131_v9 }
  0xd6   :  { %v259_v11 = vpop.f32.mrf.mxu0 }
  0xd7   :  { %v126_v12 = vadd.f32 %v259_v11, %v231_v10 }
  0xd8   :  { %v120_v13 = vpop.f32.mrf.mxu0 }
  0xd9   :  { %v121_v14 = vadd.f32 %v231_v10, %v120_v13  ;;  %v130_v16 = vmax.f32 %v126_v12, 0.0 }
  0xdb   :  { %v129_v15 = vmax.f32 %v121_v14, 0.0 }
  0xdd   :  { %268 = vmatprep.mubr.msk.f32.mxu1 %vm47_vm0, %v129_v15 }
  0xde   :  { %269 = vmatmul.mubr.msk.f32.vlgmr.msra.gmra.mxu1 %vm47_vm0, %v130_v16 }
 0x19e   :  { %v270_v18 = vpop.f32.mrf.mxu1 }
 0x19f   :  { %v220_v19 = vadd.f32 %v270_v18, %v234_v17 }
 0x1a0   :  { %v214_v20 = vpop.f32.mrf.mxu1 }
 0x1a1   :  { %225 = vst.msk [vmem:[%s377_s5 + $0x8] sm:$0xff] %vm223_vm1, %v220_v19  ;;  %v215_v21 = vadd.f32 %v234_v17, %v214_v20 }
 0x1a3   :  { %224 = vst.msk [vmem:[%s377_s5] sm:$0xff] %vm223_vm1, %v215_v21 }
 0x1a4   :  { %230 = vsyncpa [#allocation3], 1 }

</bundles_post_ra>
